<compile_context>
chip_gen: v5e
topology: v5e:2x2
jax: 0.10.0
libtpu: 0.0.40
codegen_flags: <defaults>
</compile_context>

<pallas_src>
import numpy as np
import jax
import jax.numpy as jnp
from jax import lax
from jax.experimental import pallas as pl
from jax.experimental.pallas import tpu as pltpu

# ------------- small, module-consistent hyper-parameters (demo only) -------------
E = 30            # embedding_dim / output_conv1_dim (conv input channels = E + 2)
H = 32            # hidden_dim
W = 3             # window_size (odd -> "same" conv)
L = 128           # max_sent_len (module uses 150; lane-width here for the demo)
N_REL = 6         # rel_linear2 output dim (hard-coded 6 in the module)
CIN = E + 2       # 32
PAD = W // 2


def _round_up(n, m):
    return ((n + m - 1) // m) * m


def _pad_axis(a, axis, target):
    pad = target - a.shape[axis]
    if pad <= 0:
        return a
    widths = [(0, 0)] * a.ndim
    widths[axis] = (0, pad)
    return jnp.pad(a, widths)


# ---------------------------------- Pallas kernel --------------------------------
def relation_kernel(xh_ref, xe1_ref, xe2_ref, wh_ref, we1_ref, we2_ref, b_ref,
                    out_ref):
    # xh_ref:  (bb, K_h)  bf16 flattened h_conv slab for this batch tile
    # xe1/xe2: (bb, K_e)  bf16 entity position vectors
    # wh_ref:  (K_h, 128) bf16 collapsed conv->lin1->lin2 weight (6 real columns)
    # we1/we2: (K_e, 128) bf16 collapsed weight for the e1 / e2 channels
    # b_ref:   (1, 128)   f32 folded bias (conv_b, lin1_b, lin2_b)
    # out_ref: (bb, 128)  f32 lane-dense logits (first N_REL lanes are real)
    acc = jnp.dot(xh_ref[...], wh_ref[...], preferred_element_type=jnp.float32)
    acc = acc + jnp.dot(xe1_ref[...], we1_ref[...],
                        preferred_element_type=jnp.float32)
    acc = acc + jnp.dot(xe2_ref[...], we2_ref[...],
                        preferred_element_type=jnp.float32)
    out_ref[...] = acc + b_ref[...]


# ------------------------------------ wrapper -------------------------------------
def relation_forward(h_conv, e1, e2, conv_w, conv_b, lin1_w, lin1_b,
                     lin2_w, lin2_b, *, block_b=256,
                     compute_dtype=jnp.bfloat16):
    """Batched RELATION forward.

    h_conv: (B, E, L); e1/e2: (B, L) 0/1 position vectors; torch-shaped params.
    Returns (B, N_REL) float32 logits.
    """
    f32 = jnp.float32
    B, E_, L_ = h_conv.shape
    H_, CIN_, W_ = conv_w.shape
    n_rel = lin2_w.shape[0]
    assert CIN_ == E_ + 2, "rel_conv input channels must be embedding_dim + 2"
    pad_ = W_ // 2

    # ---- fold conv -> lin1 -> lin2 into one affine map (valid: chain is affine,
    #      the module applies no activation between them).
    w1 = lin1_w.reshape(-1).astype(f32)                                   # (L,)

    def shift(v, s):  # u[l] = v[l + s], zero outside [0, L)
        if s > 0:
            return jnp.concatenate([v[s:], jnp.zeros((s,), v.dtype)])
        if s < 0:
            return jnp.concatenate([jnp.zeros((-s,), v.dtype), v[:s]])
        return v

    w1_shift = jnp.stack([shift(w1, pad_ - k) for k in range(W_)], axis=0)  # (W, L)
    # A[h, c, l] = sum_k conv_w[h, c, k] * w1[l - k + pad]
    a_fold = jnp.einsum("hck,kl->hcl", conv_w.astype(f32), w1_shift)        # (H, CIN, L)
    w_eff = jnp.einsum("rh,hcl->rcl", lin2_w.astype(f32), a_fold)           # (n_rel, CIN, L)
    b_rep = conv_b.astype(f32) * jnp.sum(w1) + lin1_b.astype(f32)[0]        # (H,)
    b_eff = lin2_b.astype(f32) + lin2_w.astype(f32) @ b_rep                 # (n_rel,)

    NL = 128                                  # lane-dense logits width
    K_h = _round_up(E_ * L_, 128)
    K_e = _round_up(L_, 128)

    # split W_eff by input stream so the wrapper never materializes a channel concat
    w_h = w_eff[:, :E_, :].reshape(n_rel, E_ * L_).T                        # (E*L, 6)
    w_e1 = w_eff[:, E_, :].T                                                # (L, 6)
    w_e2 = w_eff[:, E_ + 1, :].T                                            # (L, 6)
    w_h = _pad_axis(_pad_axis(w_h, 1, NL), 0, K_h).astype(compute_dtype)
    w_e1 = _pad_axis(_pad_axis(w_e1, 1, NL), 0, K_e).astype(compute_dtype)
    w_e2 = _pad_axis(_pad_axis(w_e2, 1, NL), 0, K_e).astype(compute_dtype)
    b_vec = _pad_axis(b_eff.reshape(1, n_rel), 1, NL).astype(f32)           # (1, 128)

    # ---- data streams: only a reshape of the contiguous h_conv slab (no concat)
    x_h = _pad_axis(h_conv.reshape(B, E_ * L_), 1, K_h).astype(compute_dtype)
    x_e1 = _pad_axis(e1, 1, K_e).astype(compute_dtype)
    x_e2 = _pad_axis(e2, 1, K_e).astype(compute_dtype)

    # ---- batch tiling: big tiles amortize per-step overhead; clamp for small B
    bb = _round_up(min(block_b, _round_up(B, 8)), 8)
    Bp = _round_up(B, bb)
    if Bp != B:
        x_h = _pad_axis(x_h, 0, Bp)
        x_e1 = _pad_axis(x_e1, 0, Bp)
        x_e2 = _pad_axis(x_e2, 0, Bp)

    grid = (Bp // bb,)
    out = pl.pallas_call(
        relation_kernel,
        out_shape=jax.ShapeDtypeStruct((Bp, NL), jnp.float32),
        grid_spec=pltpu.PrefetchScalarGridSpec(
            num_scalar_prefetch=0,
            grid=grid,
            in_specs=[
                pl.BlockSpec((bb, K_h), lambda i: (i, 0)),
                pl.BlockSpec((bb, K_e), lambda i: (i, 0)),
                pl.BlockSpec((bb, K_e), lambda i: (i, 0)),
                pl.BlockSpec((K_h, NL), lambda i: (0, 0)),
                pl.BlockSpec((K_e, NL), lambda i: (0, 0)),
                pl.BlockSpec((K_e, NL), lambda i: (0, 0)),
                pl.BlockSpec((1, NL), lambda i: (0, 0)),
            ],
            out_specs=pl.BlockSpec((bb, NL), lambda i: (i, 0)),
        ),
        compiler_params=pltpu.CompilerParams(
            dimension_semantics=("parallel",)),
    )(x_h, x_e1, x_e2, w_h, w_e1, w_e2, b_vec)
    return out[:B, :n_rel]                                                  # (B, 6)


# ----------------------- reference (plain JAX) forward ----------------------------
def relation_reference(h_conv, e1, e2, conv_w, conv_b, lin1_w, lin1_b,
                       lin2_w, lin2_b):
    pad_ = conv_w.shape[2] // 2
    x = jnp.concatenate([h_conv, e1[:, None, :], e2[:, None, :]], axis=1)   # (B,CIN,L)
    rel = lax.conv_general_dilated(
        x, conv_w, window_strides=(1,), padding=[(pad_, pad_)],
        dimension_numbers=("NCH", "OIH", "NCH")) + conv_b[None, :, None]    # (B,H,L)
    rel_rep = jnp.einsum("bhl,l->bh", rel, lin1_w.reshape(-1)) + lin1_b[0]  # (B,H)
    return rel_rep @ lin2_w.T + lin2_b[None, :]                             # (B,6)


# --------------------- entity position vectors (host glue) ------------------------
# Data-dependent scatter from pred_pair_unit (python loops in the module);
# built host-side exactly like the torch code, not inside the kernel.
def build_position_vecs(pred_pair_unit, length):
    e1 = np.zeros((length,), np.float32)
    e2 = np.zeros((length,), np.float32)
    for i, unit in enumerate(pred_pair_unit):
        num, start = int(unit[0]), int(unit[1])
        for j in range(start, start + num - 1):
            if 0 <= j < length:           # mirrors the try/except in the module
                if i % 2 == 0:
                    e1[j] = 1.0
                else:
                    e2[j] = 1.0
    return e1, e2


if __name__ == "__main__":
    key = jax.random.PRNGKey(0)
    k_in, k_cw, k_cb, k_w1, k_b1, k_w2, k_b2 = jax.random.split(key, 7)

    # batched inputs: B (example, pred-pair) instances
    B = 16
    h_conv = jax.random.normal(k_in, (B, E, L), jnp.float32)

    # deterministic (entity_len, start) pred-pair units -> 0/1 position vectors
    e1_np = np.zeros((B, L), np.float32)
    e2_np = np.zeros((B, L), np.float32)
    for b in range(B):
        pred_pair_unit = [(2 + (b % 3), (5 * b) % (L - 8)),
                          (3, (11 * b + 17) % (L - 8))]
        e1_np[b], e2_np[b] = build_position_vecs(pred_pair_unit, L)
    e1 = jnp.asarray(e1_np)
    e2 = jnp.asarray(e2_np)

    # deterministic parameter init (synthetic, torch-shaped)
    conv_w = 0.1 * jax.random.normal(k_cw, (H, CIN, W), jnp.float32)   # Conv1d (out,in,k)
    conv_b = 0.1 * jax.random.normal(k_cb, (H,), jnp.float32)
    lin1_w = 0.1 * jax.random.normal(k_w1, (1, L), jnp.float32)        # Linear(L, 1)
    lin1_b = 0.1 * jax.random.normal(k_b1, (1,), jnp.float32)
    lin2_w = 0.1 * jax.random.normal(k_w2, (N_REL, H), jnp.float32)    # Linear(H, 6)
    lin2_b = 0.1 * jax.random.normal(k_b2, (N_REL,), jnp.float32)

    out = relation_forward(h_conv, e1, e2, conv_w, conv_b,
                           lin1_w, lin1_b, lin2_w, lin2_b)
    out = jax.block_until_ready(out)

    ref = relation_reference(h_conv, e1, e2, conv_w, conv_b,
                             lin1_w, lin1_b, lin2_w, lin2_b)
    assert out.shape == (B, N_REL)
    # bf16 inputs/weights with f32 accumulation -> loosened tolerance
    np.testing.assert_allclose(np.asarray(out), np.asarray(ref),
                               rtol=5e-2, atol=5e-2)
    print("KERNEL_OK")
</pallas_src>

<mosaic_0001>
module attributes {stable_mosaic.version = 11 : i64} {
  func.func @relation_kernel(%arg0: i32, %arg1: memref<16x3840xbf16, #tpu.memory_space<vmem>>, %arg2: memref<16x128xbf16, #tpu.memory_space<vmem>>, %arg3: memref<16x128xbf16, #tpu.memory_space<vmem>>, %arg4: memref<3840x128xbf16, #tpu.memory_space<vmem>>, %arg5: memref<128x128xbf16, #tpu.memory_space<vmem>>, %arg6: memref<128x128xbf16, #tpu.memory_space<vmem>>, %arg7: memref<1x128xf32, #tpu.memory_space<vmem>>, %arg8: memref<16x128xf32, #tpu.memory_space<vmem>>) attributes {dimension_semantics = [#tpu.dimension_semantics<parallel>], iteration_bounds = array<i64: 1>, scalar_prefetch = 0 : i64, scratch_operands = 0 : i64, tpu.core_type = #tpu.core_type<tc>, window_params = [{transform_indices = @transform_0, window_bounds = array<i64: 16, 3840>}, {transform_indices = @transform_1, window_bounds = array<i64: 16, 128>}, {transform_indices = @transform_2, window_bounds = array<i64: 16, 128>}, {pipeline_mode = #tpu.pipeline_mode<synchronous>, transform_indices = @transform_3, window_bounds = array<i64: 3840, 128>}, {pipeline_mode = #tpu.pipeline_mode<synchronous>, transform_indices = @transform_4, window_bounds = array<i64: 128, 128>}, {pipeline_mode = #tpu.pipeline_mode<synchronous>, transform_indices = @transform_5, window_bounds = array<i64: 128, 128>}, {pipeline_mode = #tpu.pipeline_mode<synchronous>, transform_indices = @transform_6, window_bounds = array<i64: 1, 128>}, {transform_indices = @transform_7, window_bounds = array<i64: 16, 128>}]} {
    %c0 = arith.constant 0 : index
    %c0_0 = arith.constant 0 : index
    %0 = vector.load %arg1[%c0, %c0_0] : memref<16x3840xbf16, #tpu.memory_space<vmem>>, vector<16x3840xbf16>
    %c0_1 = arith.constant 0 : index
    %c0_2 = arith.constant 0 : index
    %1 = vector.load %arg4[%c0_1, %c0_2] : memref<3840x128xbf16, #tpu.memory_space<vmem>>, vector<3840x128xbf16>
    %cst = arith.constant dense<0.000000e+00> : vector<16x128xf32>
    %2 = tpu.matmul %0, %1, %cst {dimension_numbers = #tpu.dot_dimension_numbers<[1], [0], [0], [1], [0, 0, 1, 1], [], []>} : vector<16x3840xbf16>, vector<3840x128xbf16>, vector<16x128xf32> -> vector<16x128xf32>
    %c0_3 = arith.constant 0 : index
    %c0_4 = arith.constant 0 : index
    %3 = vector.load %arg2[%c0_3, %c0_4] : memref<16x128xbf16, #tpu.memory_space<vmem>>, vector<16x128xbf16>
    %c0_5 = arith.constant 0 : index
    %c0_6 = arith.constant 0 : index
    %4 = vector.load %arg5[%c0_5, %c0_6] : memref<128x128xbf16, #tpu.memory_space<vmem>>, vector<128x128xbf16>
    %cst_7 = arith.constant dense<0.000000e+00> : vector<16x128xf32>
    %5 = tpu.matmul %3, %4, %cst_7 {dimension_numbers = #tpu.dot_dimension_numbers<[1], [0], [0], [1], [0, 0, 1, 1], [], []>} : vector<16x128xbf16>, vector<128x128xbf16>, vector<16x128xf32> -> vector<16x128xf32>
    %6 = arith.addf %2, %5 : vector<16x128xf32>
    %c0_8 = arith.constant 0 : index
    %c0_9 = arith.constant 0 : index
    %7 = vector.load %arg3[%c0_8, %c0_9] : memref<16x128xbf16, #tpu.memory_space<vmem>>, vector<16x128xbf16>
    %c0_10 = arith.constant 0 : index
    %c0_11 = arith.constant 0 : index
    %8 = vector.load %arg6[%c0_10, %c0_11] : memref<128x128xbf16, #tpu.memory_space<vmem>>, vector<128x128xbf16>
    %cst_12 = arith.constant dense<0.000000e+00> : vector<16x128xf32>
    %9 = tpu.matmul %7, %8, %cst_12 {dimension_numbers = #tpu.dot_dimension_numbers<[1], [0], [0], [1], [0, 0, 1, 1], [], []>} : vector<16x128xbf16>, vector<128x128xbf16>, vector<16x128xf32> -> vector<16x128xf32>
    %10 = arith.addf %6, %9 : vector<16x128xf32>
    %c0_13 = arith.constant 0 : index
    %c0_14 = arith.constant 0 : index
    %11 = vector.load %arg7[%c0_13, %c0_14] : memref<1x128xf32, #tpu.memory_space<vmem>>, vector<1x128xf32>
    %12 = vector.broadcast %11 : vector<1x128xf32> to vector<16x128xf32>
    %13 = arith.addf %10, %12 : vector<16x128xf32>
    %c0_15 = arith.constant 0 : index
    %c0_16 = arith.constant 0 : index
    %14 = vector.load %arg8[%c0_15, %c0_16] : memref<16x128xf32, #tpu.memory_space<vmem>>, vector<16x128xf32>
    tpu.vector_store %arg8[%c0_15, %c0_16], %13 {strides = array<i32>} : memref<16x128xf32, #tpu.memory_space<vmem>>, vector<16x128xf32>,
    return
  }
  func.func @transform_0(%arg0: i32) -> (i32, i32) {
    %c0_i32 = arith.constant 0 : i32
    %c0_i32_0 = arith.constant 0 : i32
    return %arg0, %c0_i32 : i32, i32
  }
  func.func @transform_1(%arg0: i32) -> (i32, i32) {
    %c0_i32 = arith.constant 0 : i32
    %c0_i32_0 = arith.constant 0 : i32
    return %arg0, %c0_i32 : i32, i32
  }
  func.func @transform_2(%arg0: i32) -> (i32, i32) {
    %c0_i32 = arith.constant 0 : i32
    %c0_i32_0 = arith.constant 0 : i32
    return %arg0, %c0_i32 : i32, i32
  }
  func.func @transform_3(%arg0: i32) -> (i32, i32) {
    %c0_i32 = arith.constant 0 : i32
    %c0_i32_0 = arith.constant 0 : i32
    %c0_i32_1 = arith.constant 0 : i32
    return %c0_i32, %c0_i32_0 : i32, i32
  }
  func.func @transform_4(%arg0: i32) -> (i32, i32) {
    %c0_i32 = arith.constant 0 : i32
    %c0_i32_0 = arith.constant 0 : i32
    %c0_i32_1 = arith.constant 0 : i32
    return %c0_i32, %c0_i32_0 : i32, i32
  }
  func.func @transform_5(%arg0: i32) -> (i32, i32) {
    %c0_i32 = arith.constant 0 : i32
    %c0_i32_0 = arith.constant 0 : i32
    %c0_i32_1 = arith.constant 0 : i32
    return %c0_i32, %c0_i32_0 : i32, i32
  }
  func.func @transform_6(%arg0: i32) -> (i32, i32) {
    %c0_i32 = arith.constant 0 : i32
    %c0_i32_0 = arith.constant 0 : i32
    %c0_i32_1 = arith.constant 0 : i32
    return %c0_i32, %c0_i32_0 : i32, i32
  }
  func.func @transform_7(%arg0: i32) -> (i32, i32) {
    %c0_i32 = arith.constant 0 : i32
    %c0_i32_0 = arith.constant 0 : i32
    return %arg0, %c0_i32 : i32, i32
  }
}

</mosaic_0001>

<bundles_post_ra>
// kernel: tpu_custom_call.1
= control target key start
LH: loop header
LB: loop body
LE: loop exit
PB: predicated region body
PF: predicated region fallthrough
CT: control target
= control target key end

     0   :  { %12 = vsyncpa [#allocation3], 0  ;;  %s4569_s0 = inlined_call_operand.hbm [shape: bf16[16,3840], index: 0, kind: input, shape index: {}]   ;;  %s4570_s1 = inlined_call_operand.hbm [shape: bf16[16,128], index: 1, kind: input, shape index: {}]   ;;  %s4571_s2 = inlined_call_operand.hbm [shape: bf16[16,128], index: 2, kind: input, shape index: {}]   ;;  %s4572_s3 = inlined_call_operand.hbm [shape: bf16[3840,128], index: 3, kind: input, shape index: {}]   ;;  %s4573_s4 = inlined_call_operand.hbm [shape: bf16[128,128], index: 4, kind: input, shape index: {}]   ;;  %s4574_s5 = inlined_call_operand.hbm [shape: bf16[128,128], index: 5, kind: input, shape index: {}]   ;;  %s4575_s6 = inlined_call_operand.vmem [shape: f32[1,128], index: 6, kind: input, shape index: {}]   ;;  %s4576_s7 = inlined_call_operand.hbm [shape: f32[16,128], index: 7, kind: output, shape index: {}]  }
   0x1   :  { %13 = vsyncpa [#allocation6], 0 }
   0x2   :  { %14 = vsyncpa [#allocation9], 0 }
   0x3   :  { %15 = vsyncpa [#allocation12], 0  ;;  %s34_s26 = sshll.u32 %s4570_s1, 4  ;;  %s35_s26 = int_to_ptr.hbm [resolvable:$true] %s34_s26 }
   0x4   :  { %16 = vsyncpa [#allocation4], 0  ;;  %s4477_s27 = smov [#allocation5]   ;;  %s60_s8 = sshll.u32 %s4572_s3, 4  ;;  %s61_s8 = int_to_ptr.hbm [resolvable:$true] %s60_s8 }
   0x5   :  { %s36_s28 = sshll.u32 %s4477_s27, 4  ;;  %s4478_s9 = smov 64   ;;  %s37_s28 = int_to_ptr.vmem [resolvable:$true] %s36_s28 }
   0x6   :  { %s4479_s10 = smov 4   ;;  %s4480_s11 = smov [#allocation8]  }
   0x7   :  { %42 = dma.hbm_to_vmem [thread:$0]  %s35_s26, 128, %s37_s28, [#allocation6], %s4478_s9, %s4478_s9, %s4479_s10  }
   0x8   :  { %s62_s12 = sshll.u32 %s4480_s11, 4  ;;  %s21_s14 = sshll.u32 %s4569_s0, 4  ;;  %s63_s12 = int_to_ptr.vmem [resolvable:$true] %s62_s12  ;;  %s22_s14 = int_to_ptr.hbm [resolvable:$true] %s21_s14 }
   0x9   :  { %68 = dma.hbm_to_vmem [thread:$0]  %s61_s8, 30720, %s63_s12, [#allocation9], %s4478_s9, %s4478_s9, %s4479_s10  }
   0xa   :  { %s4481_s3 = smov [#allocation2]   ;;  %s47_s18 = sshll.u32 %s4571_s2, 4  ;;  %s48_s18 = int_to_ptr.hbm [resolvable:$true] %s47_s18 }
   0xb   :  { %s23_s15 = sshll.u32 %s4481_s3, 4  ;;  %s4482_s19 = smov 1920   ;;  %s24_s15 = int_to_ptr.vmem [resolvable:$true] %s23_s15 }
   0xc   :  { %s4483_s20 = smov 120   ;;  %s4484_s21 = smov [#allocation7]  }
   0xd   :  { %29 = dma.hbm_to_vmem [thread:$0]  %s22_s14, 3840, %s24_s15, [#allocation3], %s4482_s19, %s4482_s19, %s4483_s20  }
   0xe   :  { %s49_s22 = sshll.u32 %s4484_s21, 4  ;;  %s73_s24 = sshll.u32 %s4573_s4, 4  ;;  %s50_s22 = int_to_ptr.vmem [resolvable:$true] %s49_s22  ;;  %s74_s24 = int_to_ptr.hbm [resolvable:$true] %s73_s24 }
   0xf   :  { %55 = dma.hbm_to_vmem [thread:$0]  %s48_s18, 128, %s50_s22, [#allocation6], %s4478_s9, %s4478_s9, %s4479_s10  }
  0x10   :  { %s86_s2 = sshll.u32 %s4574_s5, 4  ;;  %s4485_s27 = smov [#allocation10]   ;;  %s87_s2 = int_to_ptr.hbm [resolvable:$true] %s86_s2 }
  0x11   :  { %s75_s28 = sshll.u32 %s4485_s27, 4  ;;  %s4486_s29 = smov [#allocation11]   ;;  %s76_s28 = int_to_ptr.vmem [resolvable:$true] %s75_s28 }
  0x12   :  { %81 = dma.hbm_to_vmem [thread:$0]  %s74_s24, 1024, %s76_s28, [#allocation9], %s4478_s9, %s4478_s9, %s4479_s10  }
  0x13   :  { %s88_s4 = sshll.u32 %s4486_s29, 4  ;;  %s89_s4 = int_to_ptr.vmem [resolvable:$true] %s88_s4 }
  0x14   :  { %94 = dma.hbm_to_vmem [thread:$0]  %s87_s2, 1024, %s89_s4, [#allocation12], %s4478_s9, %s4478_s9, %s4479_s10  }
  0x15   :  { %4467 = dma.done.wait [#allocation3], 3840  }
  0x16   :  { %4468 = vsyncadd [#allocation3], 4294963456 }
  0x17   :  { %4469 = dma.done.wait [#allocation6], 256  }
  0x18   :  { %4470 = vsyncadd [#allocation6], 4294967040 }
  0x19   :  { %4471 = dma.done.wait [#allocation9], 31744  }
  0x1a   :  { %4472 = vsyncadd [#allocation9], 4294935552 }
  0x1b   :  { %4473 = dma.done.wait [#allocation12], 1024  }
  0x1c   :  { %4474 = vsyncadd [#allocation12], 4294966272  ;;  %v4275_v0 = vld [vmem:[#allocation10 + $0x38] sm:$0xff]  ;;  %v4274_v4 = vld [vmem:[#allocation10 + $0x30] sm:$0xff]  ;;  %s4487_s8 = smov [#allocation13]   ;;  %s2829_s12 = sshll.u32 %s4576_s7, 4  ;;  %s2830_s12 = int_to_ptr.hbm [resolvable:$true] %s2829_s12 }
  0x1d   :  { %v4034_v1 = vld [vmem:[#allocation8 + $0x38] sm:$0xff]  ;;  %703 = vmatpush.bf16.msra.mxu0 %v4275_v0  ;;  %v4033_v5 = vld [vmem:[#allocation8 + $0x30] sm:$0xff]  ;;  %v4273_v8 = vld [vmem:[#allocation10 + $0x28] sm:$0xff]  ;;  %s2827_s9 = sshll.u32 %s4487_s8, 4  ;;  %s4489_s13 = smov 8   ;;  %s2828_s9 = int_to_ptr.vmem [resolvable:$true] %s2827_s9 }
  0x1e   :  { %v4042_v2 = vld [vmem:[#allocation8 + $0x78] sm:$0xff]  ;;  %2307 = vmatpush.bf16.msra.mxu1 %v4034_v1  ;;  %v4041_v6 = vld [vmem:[#allocation8 + $0x70] sm:$0xff]  ;;  %v4032_v9 = vld [vmem:[#allocation8 + $0x28] sm:$0xff] }
  0x1f   :  { %v4050_v3 = vld [vmem:[#allocation8 + $0xb8] sm:$0xff]  ;;  %2321 = vmatpush.bf16.msra.mxu2 %v4042_v2  ;;  %v4049_v7 = vld [vmem:[#allocation8 + $0xb0] sm:$0xff]  ;;  %v4040_v10 = vld [vmem:[#allocation8 + $0x68] sm:$0xff] }
  0x20   :  { %2335 = vmatpush.bf16.msra.mxu3 %v4050_v3  ;;  %v4048_v11 = vld [vmem:[#allocation8 + $0xa8] sm:$0xff]  ;;  %v4272_v12 = vld [vmem:[#allocation10 + $0x20] sm:$0xff]  ;;  %v4271_v16 = vld [vmem:[#allocation10 + $0x18] sm:$0xff] }
  0x21   :  { %704 = vmatpush.bf16.msra.mxu0 %v4274_v4  ;;  %v4031_v13 = vld [vmem:[#allocation8 + $0x20] sm:$0xff]  ;;  %v4030_v17 = vld [vmem:[#allocation8 + $0x18] sm:$0xff]  ;;  %v4270_v20 = vld [vmem:[#allocation10 + $0x10] sm:$0xff] }
  0x22   :  { %2308 = vmatpush.bf16.msra.mxu1 %v4033_v5  ;;  %v4039_v14 = vld [vmem:[#allocation8 + $0x60] sm:$0xff]  ;;  %v4038_v18 = vld [vmem:[#allocation8 + $0x58] sm:$0xff]  ;;  %v4029_v21 = vld [vmem:[#allocation8 + $0x10] sm:$0xff] }
  0x23   :  { %2322 = vmatpush.bf16.msra.mxu2 %v4041_v6  ;;  %v4047_v15 = vld [vmem:[#allocation8 + $0xa0] sm:$0xff]  ;;  %v4046_v19 = vld [vmem:[#allocation8 + $0x98] sm:$0xff]  ;;  %v4037_v22 = vld [vmem:[#allocation8 + $0x50] sm:$0xff] }
  0x24   :  { %2336 = vmatpush.bf16.msra.mxu3 %v4049_v7  ;;  %v4045_v23 = vld [vmem:[#allocation8 + $0x90] sm:$0xff]  ;;  %v4269_v24 = vld [vmem:[#allocation10 + $0x8] sm:$0xff]  ;;  %v4268_v28 = vld [vmem:[#allocation10] sm:$0xff] }
  0x25   :  { %705 = vmatpush.bf16.msra.mxu0 %v4273_v8  ;;  %v4028_v25 = vld [vmem:[#allocation8 + $0x8] sm:$0xff]  ;;  %v4027_v29 = vld [vmem:[#allocation8] sm:$0xff]  ;;  %v4058_v32 = vld [vmem:[#allocation8 + $0xf8] sm:$0xff] }
  0x26   :  { %2309 = vmatpush.bf16.msra.mxu1 %v4032_v9  ;;  %v4036_v26 = vld [vmem:[#allocation8 + $0x48] sm:$0xff]  ;;  %v4035_v30 = vld [vmem:[#allocation8 + $0x40] sm:$0xff]  ;;  %v4066_v33 = vld [vmem:[#allocation8 + $0x138] sm:$0xff] }
  0x27   :  { %2323 = vmatpush.bf16.msra.mxu2 %v4040_v10  ;;  %v4044_v27 = vld [vmem:[#allocation8 + $0x88] sm:$0xff]  ;;  %v4043_v31 = vld [vmem:[#allocation8 + $0x80] sm:$0xff]  ;;  %v2885_v35 = vld [vmem:[#allocation2 + $0x78] sm:$0xf0] }
  0x28   :  { %2337 = vmatpush.bf16.msra.mxu3 %v4048_v11  ;;  %v3997_v34 = vld [vmem:[#allocation2 + $0x4] sm:$0xf]  ;;  %v2883_v36 = vld [vmem:[#allocation2] sm:$0xf]  ;;  %v4012_v37 = vld [vmem:[#allocation2 + $0x74] sm:$0xf0] }
  0x29   :  { %706 = vmatpush.bf16.msra.mxu0 %v4272_v12  ;;  %v2891_v38 = vld [vmem:[#allocation2 + $0x8] sm:$0xf]  ;;  %v4013_v39 = vld [vmem:[#allocation2 + $0x7c] sm:$0xf0]  ;;  %v4074_v40 = vld [vmem:[#allocation8 + $0x178] sm:$0xff]  ;;  %v2888_v43 = vor.u32 %v3997_v34, %v2885_v35  ;;  %v2884_v44 = vor.u32 %v4012_v37, %v2883_v36 }
  0x2a   :  { %2310 = vmatpush.bf16.msra.mxu1 %v4031_v13  ;;  %v4082_v41 = vld [vmem:[#allocation8 + $0x1b8] sm:$0xff]  ;;  %v4267_v42 = vld [vmem:[#allocation5] sm:$0xff]  ;;  %v2892_v45 = vor.u32 %v4013_v39, %v2891_v38  ;;  %v4056_v50 = vld [vmem:[#allocation8 + $0xe8] sm:$0xff] }
  0x2b   :  { %2324 = vmatpush.bf16.msra.mxu2 %v4039_v14  ;;  %v4057_v46 = vld [vmem:[#allocation8 + $0xf0] sm:$0xff]  ;;  %v4064_v51 = vld [vmem:[#allocation8 + $0x128] sm:$0xff]  ;;  %v4055_v54 = vld [vmem:[#allocation8 + $0xe0] sm:$0xff] }
  0x2c   :  { %2338 = vmatpush.bf16.msra.mxu3 %v4047_v15  ;;  %v4065_v47 = vld [vmem:[#allocation8 + $0x130] sm:$0xff]  ;;  %v4072_v52 = vld [vmem:[#allocation8 + $0x168] sm:$0xff]  ;;  %v4063_v55 = vld [vmem:[#allocation8 + $0x120] sm:$0xff] }
  0x2d   :  { %707 = vmatpush.bf16.msra.mxu0 %v4271_v16  ;;  %v4073_v48 = vld [vmem:[#allocation8 + $0x170] sm:$0xff]  ;;  %v4080_v53 = vld [vmem:[#allocation8 + $0x1a8] sm:$0xff]  ;;  %v4071_v56 = vld [vmem:[#allocation8 + $0x160] sm:$0xff] }
  0x2e   :  { %2311 = vmatpush.bf16.msra.mxu1 %v4030_v17  ;;  %v4081_v49 = vld [vmem:[#allocation8 + $0x1b0] sm:$0xff]  ;;  %v4079_v57 = vld [vmem:[#allocation8 + $0x1a0] sm:$0xff]  ;;  %v4054_v58 = vld [vmem:[#allocation8 + $0xd8] sm:$0xff] }
  0x2f   :  { %2325 = vmatpush.bf16.msra.mxu2 %v4038_v18  ;;  %v4062_v59 = vld [vmem:[#allocation8 + $0x118] sm:$0xff]  ;;  %v4053_v62 = vld [vmem:[#allocation8 + $0xd0] sm:$0xff]  ;;  %v4052_v2 = vld [vmem:[#allocation8 + $0xc8] sm:$0xff] }
  0x30   :  { %2339 = vmatpush.bf16.msra.mxu3 %v4046_v19  ;;  %v4070_v60 = vld [vmem:[#allocation8 + $0x158] sm:$0xff]  ;;  %v4061_v63 = vld [vmem:[#allocation8 + $0x110] sm:$0xff]  ;;  %v4060_v3 = vld [vmem:[#allocation8 + $0x108] sm:$0xff] }
  0x31   :  { %708 = vmatpush.bf16.msra.mxu0 %v4270_v20  ;;  %v4078_v61 = vld [vmem:[#allocation8 + $0x198] sm:$0xff]  ;;  %v4069_v0 = vld [vmem:[#allocation8 + $0x150] sm:$0xff]  ;;  %v4068_v4 = vld [vmem:[#allocation8 + $0x148] sm:$0xff] }
  0x32   :  { %2312 = vmatpush.bf16.msra.mxu1 %v4029_v21  ;;  %v4077_v1 = vld [vmem:[#allocation8 + $0x190] sm:$0xff]  ;;  %v4076_v5 = vld [vmem:[#allocation8 + $0x188] sm:$0xff]  ;;  %v4051_v6 = vld [vmem:[#allocation8 + $0xc0] sm:$0xff] }
  0x33   :  { %2326 = vmatpush.bf16.msra.mxu2 %v4037_v22  ;;  %v4059_v7 = vld [vmem:[#allocation8 + $0x100] sm:$0xff]  ;;  %v4090_v10 = vld [vmem:[#allocation8 + $0x1f8] sm:$0xff]  ;;  %v3998_v12 = vld [vmem:[#allocation2 + $0xc] sm:$0xf] }
  0x34   :  { %2340 = vmatpush.bf16.msra.mxu3 %v4045_v23  ;;  %v4067_v8 = vld [vmem:[#allocation8 + $0x140] sm:$0xff]  ;;  %v4098_v11 = vld [vmem:[#allocation8 + $0x238] sm:$0xff]  ;;  %v3999_v14 = vld [vmem:[#allocation2 + $0x14] sm:$0xf] }
  0x35   :  { %709 = vmatpush.bf16.msra.mxu0 %v4269_v24  ;;  %v4075_v9 = vld [vmem:[#allocation8 + $0x180] sm:$0xff]  ;;  %v2901_v15 = vld [vmem:[#allocation2 + $0x88] sm:$0xf0]  ;;  %v2899_v16 = vld [vmem:[#allocation2 + $0x10] sm:$0xf] }
  0x36   :  { %2313 = vmatpush.bf16.msra.mxu1 %v4028_v25  ;;  %v2893_v13 = vld [vmem:[#allocation2 + $0x80] sm:$0xf0]  ;;  %v4014_v17 = vld [vmem:[#allocation2 + $0x84] sm:$0xf0]  ;;  %v2907_v18 = vld [vmem:[#allocation2 + $0x18] sm:$0xf]  ;;  %v2904_v23 = vor.u32 %v3999_v14, %v2901_v15 }
  0x37   :  { %2327 = vmatpush.bf16.msra.mxu2 %v4036_v26  ;;  %v4015_v19 = vld [vmem:[#allocation2 + $0x8c] sm:$0xf0]  ;;  %v4106_v20 = vld [vmem:[#allocation8 + $0x278] sm:$0xff]  ;;  %v2896_v22 = vor.u32 %v3998_v12, %v2893_v13  ;;  %v2900_v24 = vor.u32 %v4014_v17, %v2899_v16  ;;  %v4087_v34 = vld [vmem:[#allocation8 + $0x1e0] sm:$0xff] }
  0x38   :  { %2341 = vmatpush.bf16.msra.mxu3 %v4044_v27  ;;  %v4114_v21 = vld [vmem:[#allocation8 + $0x2b8] sm:$0xff]  ;;  %v2908_v25 = vor.u32 %v4015_v19, %v2907_v18  ;;  %v4089_v26 = vld [vmem:[#allocation8 + $0x1f0] sm:$0xff]  ;;  %v4095_v35 = vld [vmem:[#allocation8 + $0x220] sm:$0xff] }
  0x39   :  { %710 = vmatpush.bf16.msra.mxu0 %v4268_v28  ;;  %v4097_v27 = vld [vmem:[#allocation8 + $0x230] sm:$0xff]  ;;  %v4103_v36 = vld [vmem:[#allocation8 + $0x260] sm:$0xff]  ;;  %v4086_v38 = vld [vmem:[#allocation8 + $0x1d8] sm:$0xff] }
  0x3a   :  { %2314 = vmatpush.bf16.msra.mxu1 %v4027_v29  ;;  %v4105_v28 = vld [vmem:[#allocation8 + $0x270] sm:$0xff]  ;;  %v4111_v37 = vld [vmem:[#allocation8 + $0x2a0] sm:$0xff]  ;;  %v4094_v39 = vld [vmem:[#allocation8 + $0x218] sm:$0xff] }
  0x3b   :  { %2328 = vmatpush.bf16.msra.mxu2 %v4035_v30  ;;  %v4113_v29 = vld [vmem:[#allocation8 + $0x2b0] sm:$0xff]  ;;  %v4088_v30 = vld [vmem:[#allocation8 + $0x1e8] sm:$0xff]  ;;  %v4119_v14 = vld [vmem:[#allocation8 + $0x2e0] sm:$0xff] }
  0x3c   :  { %2342 = vmatpush.bf16.msra.mxu3 %v4043_v31  ;;  %711 = vmatmul.bf16.vlgmr.msra.gmra.mxu0 %v4267_v42  ;;  %v4096_v31 = vld [vmem:[#allocation8 + $0x228] sm:$0xff]  ;;  %v4085_v42 = vld [vmem:[#allocation8 + $0x1d0] sm:$0xff]  ;;  %v4127_v15 = vld [vmem:[#allocation8 + $0x320] sm:$0xff] }
  0x3d   :  { %2349 = vmatpush.bf16.msrb.mxu0 %v4058_v32  ;;  %2315 = vmatmul.bf16.vlgmr.msra.gmra.mxu1 %v2884_v44  ;;  %v4104_v32 = vld [vmem:[#allocation8 + $0x268] sm:$0xff]  ;;  %v4101_v44 = vld [vmem:[#allocation8 + $0x250] sm:$0xff]  ;;  %v4135_v16 = vld [vmem:[#allocation8 + $0x360] sm:$0xff] }
  0x3e   :  { %2363 = vmatpush.bf16.msrb.mxu1 %v4066_v33  ;;  %2329 = vmatmul.bf16.vlgmr.msra.gmra.mxu2 %v2888_v43  ;;  %v4112_v33 = vld [vmem:[#allocation8 + $0x2a8] sm:$0xff]  ;;  %v4093_v43 = vld [vmem:[#allocation8 + $0x210] sm:$0xff]  ;;  %v4143_v17 = vld [vmem:[#allocation8 + $0x3a0] sm:$0xff] }
  0x3f   :  { %2377 = vmatpush.bf16.msrb.mxu2 %v4074_v40  ;;  %2343 = vmatmul.bf16.vlgmr.msra.gmra.mxu3 %v2892_v45  ;;  %v4102_v40 = vld [vmem:[#allocation8 + $0x258] sm:$0xff]  ;;  %v4109_v45 = vld [vmem:[#allocation8 + $0x290] sm:$0xff]  ;;  %v4136_v12 = vld [vmem:[#allocation8 + $0x368] sm:$0xff] }
  0x40   :  { %2391 = vmatpush.bf16.msrb.mxu3 %v4082_v41  ;;  %v4110_v41 = vld [vmem:[#allocation8 + $0x298] sm:$0xff]  ;;  %v4144_v13 = vld [vmem:[#allocation8 + $0x3a8] sm:$0xff] }
  0x41   :  { %2350 = vmatpush.bf16.msrb.mxu0 %v4057_v46  ;;  %v4084_v46 = vld [vmem:[#allocation8 + $0x1c8] sm:$0xff]  ;;  %v4118_v18 = vld [vmem:[#allocation8 + $0x2d8] sm:$0xff] }
  0x42   :  { %2364 = vmatpush.bf16.msrb.mxu1 %v4065_v47  ;;  %v4092_v47 = vld [vmem:[#allocation8 + $0x208] sm:$0xff]  ;;  %v4126_v19 = vld [vmem:[#allocation8 + $0x318] sm:$0xff] }
  0x43   :  { %2378 = vmatpush.bf16.msrb.mxu2 %v4073_v48  ;;  %v4100_v48 = vld [vmem:[#allocation8 + $0x248] sm:$0xff] }
  0x44   :  { %2392 = vmatpush.bf16.msrb.mxu3 %v4081_v49  ;;  %v4108_v49 = vld [vmem:[#allocation8 + $0x288] sm:$0xff] }
  0x45   :  { %2351 = vmatpush.bf16.msrb.mxu0 %v4056_v50  ;;  %v4083_v50 = vld [vmem:[#allocation8 + $0x1c0] sm:$0xff] }
  0x46   :  { %2365 = vmatpush.bf16.msrb.mxu1 %v4064_v51  ;;  %v4091_v51 = vld [vmem:[#allocation8 + $0x200] sm:$0xff] }
  0x47   :  { %2379 = vmatpush.bf16.msrb.mxu2 %v4072_v52  ;;  %v4099_v52 = vld [vmem:[#allocation8 + $0x240] sm:$0xff] }
  0x48   :  { %2393 = vmatpush.bf16.msrb.mxu3 %v4080_v53  ;;  %v4107_v53 = vld [vmem:[#allocation8 + $0x280] sm:$0xff] }
  0x49   :  { %2352 = vmatpush.bf16.msrb.mxu0 %v4055_v54  ;;  %v4122_v54 = vld [vmem:[#allocation8 + $0x2f8] sm:$0xff] }
  0x4a   :  { %2366 = vmatpush.bf16.msrb.mxu1 %v4063_v55  ;;  %v4130_v55 = vld [vmem:[#allocation8 + $0x338] sm:$0xff] }
  0x4b   :  { %2380 = vmatpush.bf16.msrb.mxu2 %v4071_v56  ;;  %v4000_v56 = vld [vmem:[#allocation2 + $0x1c] sm:$0xf] }
  0x4c   :  { %2394 = vmatpush.bf16.msrb.mxu3 %v4079_v57  ;;  %v2909_v57 = vld [vmem:[#allocation2 + $0x90] sm:$0xf0] }
  0x4d   :  { %2353 = vmatpush.bf16.msrb.mxu0 %v4054_v58  ;;  %v4001_v58 = vld [vmem:[#allocation2 + $0x24] sm:$0xf] }
  0x4e   :  { %2367 = vmatpush.bf16.msrb.mxu1 %v4062_v59  ;;  %v2917_v59 = vld [vmem:[#allocation2 + $0x98] sm:$0xf0] }
  0x4f   :  { %2381 = vmatpush.bf16.msrb.mxu2 %v4070_v60  ;;  %v2915_v60 = vld [vmem:[#allocation2 + $0x20] sm:$0xf] }
  0x50   :  { %2395 = vmatpush.bf16.msrb.mxu3 %v4078_v61  ;;  %v4016_v61 = vld [vmem:[#allocation2 + $0x94] sm:$0xf0] }
  0x51   :  { %2354 = vmatpush.bf16.msrb.mxu0 %v4053_v62  ;;  %v2923_v62 = vld [vmem:[#allocation2 + $0x28] sm:$0xf] }
  0x52   :  { %2368 = vmatpush.bf16.msrb.mxu1 %v4061_v63  ;;  %v4017_v63 = vld [vmem:[#allocation2 + $0x9c] sm:$0xf0] }
  0x53   :  { %2382 = vmatpush.bf16.msrb.mxu2 %v4069_v0  ;;  %v4138_v0 = vld [vmem:[#allocation8 + $0x378] sm:$0xff] }
  0x54   :  { %2396 = vmatpush.bf16.msrb.mxu3 %v4077_v1  ;;  %v4146_v1 = vld [vmem:[#allocation8 + $0x3b8] sm:$0xff] }
  0x55   :  { %2355 = vmatpush.bf16.msrb.mxu0 %v4052_v2  ;;  %v2912_v2 = vor.u32 %v4000_v56, %v2909_v57  ;;  %v4168_v56 = vld [vmem:[#allocation8 + $0x468] sm:$0xff] }
  0x56   :  { %2369 = vmatpush.bf16.msrb.mxu1 %v4060_v3  ;;  %v2920_v3 = vor.u32 %v4001_v58, %v2917_v59  ;;  %v4176_v57 = vld [vmem:[#allocation8 + $0x4a8] sm:$0xff]  ;;  %v4151_v58 = vld [vmem:[#allocation8 + $0x3e0] sm:$0xff] }
  0x57   :  { %2383 = vmatpush.bf16.msrb.mxu2 %v4068_v4  ;;  %v2916_v4 = vor.u32 %v4016_v61, %v2915_v60  ;;  %v4159_v59 = vld [vmem:[#allocation8 + $0x420] sm:$0xff] }
  0x58   :  { %2397 = vmatpush.bf16.msrb.mxu3 %v4076_v5  ;;  %v2924_v5 = vor.u32 %v4017_v63, %v2923_v62  ;;  %v4167_v60 = vld [vmem:[#allocation8 + $0x460] sm:$0xff]  ;;  %v4150_v62 = vld [vmem:[#allocation8 + $0x3d8] sm:$0xff] }
  0x59   :  { %2356 = vmatpush.bf16.msrb.mxu0 %v4051_v6  ;;  %v4121_v6 = vld [vmem:[#allocation8 + $0x2f0] sm:$0xff]  ;;  %v4175_v61 = vld [vmem:[#allocation8 + $0x4a0] sm:$0xff]  ;;  %v4158_v63 = vld [vmem:[#allocation8 + $0x418] sm:$0xff] }
  0x5a   :  { %2370 = vmatpush.bf16.msrb.mxu1 %v4059_v7  ;;  %v4129_v7 = vld [vmem:[#allocation8 + $0x330] sm:$0xff] }
  0x5b   :  { %2384 = vmatpush.bf16.msrb.mxu2 %v4067_v8  ;;  %v4137_v8 = vld [vmem:[#allocation8 + $0x370] sm:$0xff] }
  0x5c   :  { %2398 = vmatpush.bf16.msrb.mxu3 %v4075_v9  ;;  %2357 = vmatmul.bf16.vlgmr.msrb.gmra.mxu0 %v2896_v22  ;;  %v4145_v9 = vld [vmem:[#allocation8 + $0x3b0] sm:$0xff] }
  0x5d   :  { %2405 = vmatpush.bf16.msra.mxu0 %v4090_v10  ;;  %2371 = vmatmul.bf16.vlgmr.msrb.gmra.mxu1 %v2900_v24  ;;  %v4120_v10 = vld [vmem:[#allocation8 + $0x2e8] sm:$0xff]  ;;  %v4117_v22 = vld [vmem:[#allocation8 + $0x2d0] sm:$0xff] }
  0x5e   :  { %2419 = vmatpush.bf16.msra.mxu1 %v4098_v11  ;;  %2385 = vmatmul.bf16.vlgmr.msrb.gmra.mxu2 %v2904_v23  ;;  %v4128_v11 = vld [vmem:[#allocation8 + $0x328] sm:$0xff]  ;;  %v4125_v23 = vld [vmem:[#allocation8 + $0x310] sm:$0xff] }
  0x5f   :  { %2433 = vmatpush.bf16.msra.mxu2 %v4106_v20  ;;  %2399 = vmatmul.bf16.vlgmr.msrb.gmra.mxu3 %v2908_v25  ;;  %v4134_v20 = vld [vmem:[#allocation8 + $0x358] sm:$0xff]  ;;  %v4133_v24 = vld [vmem:[#allocation8 + $0x350] sm:$0xff] }
  0x60   :  { %2447 = vmatpush.bf16.msra.mxu3 %v4114_v21  ;;  %v4142_v21 = vld [vmem:[#allocation8 + $0x398] sm:$0xff]  ;;  %v4141_v25 = vld [vmem:[#allocation8 + $0x390] sm:$0xff] }
  0x61   :  { %2406 = vmatpush.bf16.msra.mxu0 %v4089_v26  ;;  %v4116_v26 = vld [vmem:[#allocation8 + $0x2c8] sm:$0xff] }
  0x62   :  { %2420 = vmatpush.bf16.msra.mxu1 %v4097_v27  ;;  %v4124_v27 = vld [vmem:[#allocation8 + $0x308] sm:$0xff] }
  0x63   :  { %2434 = vmatpush.bf16.msra.mxu2 %v4105_v28  ;;  %v4132_v28 = vld [vmem:[#allocation8 + $0x348] sm:$0xff] }
  0x64   :  { %2448 = vmatpush.bf16.msra.mxu3 %v4113_v29  ;;  %v4140_v29 = vld [vmem:[#allocation8 + $0x388] sm:$0xff] }
  0x65   :  { %2407 = vmatpush.bf16.msra.mxu0 %v4088_v30  ;;  %v4115_v30 = vld [vmem:[#allocation8 + $0x2c0] sm:$0xff] }
  0x66   :  { %2421 = vmatpush.bf16.msra.mxu1 %v4096_v31  ;;  %v4123_v31 = vld [vmem:[#allocation8 + $0x300] sm:$0xff] }
  0x67   :  { %2435 = vmatpush.bf16.msra.mxu2 %v4104_v32  ;;  %v4131_v32 = vld [vmem:[#allocation8 + $0x340] sm:$0xff] }
  0x68   :  { %2449 = vmatpush.bf16.msra.mxu3 %v4112_v33  ;;  %v4139_v33 = vld [vmem:[#allocation8 + $0x380] sm:$0xff] }
  0x69   :  { %2408 = vmatpush.bf16.msra.mxu0 %v4087_v34  ;;  %v4154_v34 = vld [vmem:[#allocation8 + $0x3f8] sm:$0xff] }
  0x6a   :  { %2422 = vmatpush.bf16.msra.mxu1 %v4095_v35  ;;  %v4162_v35 = vld [vmem:[#allocation8 + $0x438] sm:$0xff] }
  0x6b   :  { %2436 = vmatpush.bf16.msra.mxu2 %v4103_v36  ;;  %v4002_v36 = vld [vmem:[#allocation2 + $0x2c] sm:$0xf] }
  0x6c   :  { %2450 = vmatpush.bf16.msra.mxu3 %v4111_v37  ;;  %v2925_v37 = vld [vmem:[#allocation2 + $0xa0] sm:$0xf0] }
  0x6d   :  { %2409 = vmatpush.bf16.msra.mxu0 %v4086_v38  ;;  %v4003_v38 = vld [vmem:[#allocation2 + $0x34] sm:$0xf] }
  0x6e   :  { %2423 = vmatpush.bf16.msra.mxu1 %v4094_v39  ;;  %v2933_v39 = vld [vmem:[#allocation2 + $0xa8] sm:$0xf0] }
  0x6f   :  { %2437 = vmatpush.bf16.msra.mxu2 %v4102_v40  ;;  %v2931_v40 = vld [vmem:[#allocation2 + $0x30] sm:$0xf] }
  0x70   :  { %2451 = vmatpush.bf16.msra.mxu3 %v4110_v41  ;;  %v4018_v41 = vld [vmem:[#allocation2 + $0xa4] sm:$0xf0] }
  0x71   :  { %2410 = vmatpush.bf16.msra.mxu0 %v4085_v42  ;;  %v2939_v42 = vld [vmem:[#allocation2 + $0x38] sm:$0xf] }
  0x72   :  { %2424 = vmatpush.bf16.msra.mxu1 %v4093_v43  ;;  %v4019_v43 = vld [vmem:[#allocation2 + $0xac] sm:$0xf0] }
  0x73   :  { %2438 = vmatpush.bf16.msra.mxu2 %v4101_v44  ;;  %v4170_v44 = vld [vmem:[#allocation8 + $0x478] sm:$0xff] }
  0x74   :  { %2452 = vmatpush.bf16.msra.mxu3 %v4109_v45  ;;  %v4178_v45 = vld [vmem:[#allocation8 + $0x4b8] sm:$0xff] }
  0x75   :  { %2411 = vmatpush.bf16.msra.mxu0 %v4084_v46  ;;  %v2928_v46 = vor.u32 %v4002_v36, %v2925_v37  ;;  %v4200_v36 = vld [vmem:[#allocation8 + $0x568] sm:$0xff] }
  0x76   :  { %2425 = vmatpush.bf16.msra.mxu1 %v4092_v47  ;;  %v2936_v47 = vor.u32 %v4003_v38, %v2933_v39  ;;  %v4208_v37 = vld [vmem:[#allocation8 + $0x5a8] sm:$0xff]  ;;  %v4183_v38 = vld [vmem:[#allocation8 + $0x4e0] sm:$0xff] }
  0x77   :  { %2439 = vmatpush.bf16.msra.mxu2 %v4100_v48  ;;  %v2932_v48 = vor.u32 %v4018_v41, %v2931_v40  ;;  %v4191_v39 = vld [vmem:[#allocation8 + $0x520] sm:$0xff] }
  0x78   :  { %2453 = vmatpush.bf16.msra.mxu3 %v4108_v49  ;;  %v2940_v49 = vor.u32 %v4019_v43, %v2939_v42  ;;  %v4199_v40 = vld [vmem:[#allocation8 + $0x560] sm:$0xff]  ;;  %v4182_v42 = vld [vmem:[#allocation8 + $0x4d8] sm:$0xff] }
  0x79   :  { %2412 = vmatpush.bf16.msra.mxu0 %v4083_v50  ;;  %v4153_v50 = vld [vmem:[#allocation8 + $0x3f0] sm:$0xff]  ;;  %v4207_v41 = vld [vmem:[#allocation8 + $0x5a0] sm:$0xff]  ;;  %v4190_v43 = vld [vmem:[#allocation8 + $0x518] sm:$0xff] }
  0x7a   :  { %2426 = vmatpush.bf16.msra.mxu1 %v4091_v51  ;;  %v4161_v51 = vld [vmem:[#allocation8 + $0x430] sm:$0xff] }
  0x7b   :  { %2440 = vmatpush.bf16.msra.mxu2 %v4099_v52  ;;  %v4169_v52 = vld [vmem:[#allocation8 + $0x470] sm:$0xff] }
  0x7c   :  { %2454 = vmatpush.bf16.msra.mxu3 %v4107_v53  ;;  %2413 = vmatmul.bf16.vlgmr.msra.gmra.mxu0 %v2912_v2  ;;  %v4177_v53 = vld [vmem:[#allocation8 + $0x4b0] sm:$0xff] }
  0x7d   :  { %2461 = vmatpush.bf16.msrb.mxu0 %v4122_v54  ;;  %2427 = vmatmul.bf16.vlgmr.msra.gmra.mxu1 %v2916_v4  ;;  %v4152_v54 = vld [vmem:[#allocation8 + $0x3e8] sm:$0xff]  ;;  %v4149_v2 = vld [vmem:[#allocation8 + $0x3d0] sm:$0xff] }
  0x7e   :  { %2475 = vmatpush.bf16.msrb.mxu1 %v4130_v55  ;;  %2441 = vmatmul.bf16.vlgmr.msra.gmra.mxu2 %v2920_v3  ;;  %v4160_v55 = vld [vmem:[#allocation8 + $0x428] sm:$0xff]  ;;  %v4157_v3 = vld [vmem:[#allocation8 + $0x410] sm:$0xff] }
  0x7f   :  { %2489 = vmatpush.bf16.msrb.mxu2 %v4138_v0  ;;  %2455 = vmatmul.bf16.vlgmr.msra.gmra.mxu3 %v2924_v5  ;;  %v4166_v0 = vld [vmem:[#allocation8 + $0x458] sm:$0xff]  ;;  %v4165_v4 = vld [vmem:[#allocation8 + $0x450] sm:$0xff] }
  0x80   :  { %2503 = vmatpush.bf16.msrb.mxu3 %v4146_v1  ;;  %v4174_v1 = vld [vmem:[#allocation8 + $0x498] sm:$0xff]  ;;  %v4173_v5 = vld [vmem:[#allocation8 + $0x490] sm:$0xff] }
  0x81   :  { %2462 = vmatpush.bf16.msrb.mxu0 %v4121_v6  ;;  %v4148_v6 = vld [vmem:[#allocation8 + $0x3c8] sm:$0xff] }
  0x82   :  { %2476 = vmatpush.bf16.msrb.mxu1 %v4129_v7  ;;  %v4156_v7 = vld [vmem:[#allocation8 + $0x408] sm:$0xff] }
  0x83   :  { %2490 = vmatpush.bf16.msrb.mxu2 %v4137_v8  ;;  %v4164_v8 = vld [vmem:[#allocation8 + $0x448] sm:$0xff] }
  0x84   :  { %2504 = vmatpush.bf16.msrb.mxu3 %v4145_v9  ;;  %v4172_v9 = vld [vmem:[#allocation8 + $0x488] sm:$0xff] }
  0x85   :  { %2463 = vmatpush.bf16.msrb.mxu0 %v4120_v10  ;;  %v4147_v10 = vld [vmem:[#allocation8 + $0x3c0] sm:$0xff] }
  0x86   :  { %2477 = vmatpush.bf16.msrb.mxu1 %v4128_v11  ;;  %v4155_v11 = vld [vmem:[#allocation8 + $0x400] sm:$0xff] }
  0x87   :  { %2491 = vmatpush.bf16.msrb.mxu2 %v4136_v12  ;;  %v4163_v12 = vld [vmem:[#allocation8 + $0x440] sm:$0xff] }
  0x88   :  { %2505 = vmatpush.bf16.msrb.mxu3 %v4144_v13  ;;  %v4171_v13 = vld [vmem:[#allocation8 + $0x480] sm:$0xff] }
  0x89   :  { %2464 = vmatpush.bf16.msrb.mxu0 %v4119_v14  ;;  %v4186_v14 = vld [vmem:[#allocation8 + $0x4f8] sm:$0xff] }
  0x8a   :  { %2478 = vmatpush.bf16.msrb.mxu1 %v4127_v15  ;;  %v4194_v15 = vld [vmem:[#allocation8 + $0x538] sm:$0xff] }
  0x8b   :  { %2492 = vmatpush.bf16.msrb.mxu2 %v4135_v16  ;;  %v4004_v16 = vld [vmem:[#allocation2 + $0x3c] sm:$0xf] }
  0x8c   :  { %2506 = vmatpush.bf16.msrb.mxu3 %v4143_v17  ;;  %v2941_v17 = vld [vmem:[#allocation2 + $0xb0] sm:$0xf0] }
  0x8d   :  { %2465 = vmatpush.bf16.msrb.mxu0 %v4118_v18  ;;  %v4005_v18 = vld [vmem:[#allocation2 + $0x44] sm:$0xf] }
  0x8e   :  { %2479 = vmatpush.bf16.msrb.mxu1 %v4126_v19  ;;  %v2949_v19 = vld [vmem:[#allocation2 + $0xb8] sm:$0xf0] }
  0x8f   :  { %2493 = vmatpush.bf16.msrb.mxu2 %v4134_v20  ;;  %v2947_v20 = vld [vmem:[#allocation2 + $0x40] sm:$0xf] }
  0x90   :  { %2507 = vmatpush.bf16.msrb.mxu3 %v4142_v21  ;;  %v4020_v21 = vld [vmem:[#allocation2 + $0xb4] sm:$0xf0] }
  0x91   :  { %2466 = vmatpush.bf16.msrb.mxu0 %v4117_v22  ;;  %v2955_v22 = vld [vmem:[#allocation2 + $0x48] sm:$0xf] }
  0x92   :  { %2480 = vmatpush.bf16.msrb.mxu1 %v4125_v23  ;;  %v4021_v23 = vld [vmem:[#allocation2 + $0xbc] sm:$0xf0] }
  0x93   :  { %2494 = vmatpush.bf16.msrb.mxu2 %v4133_v24  ;;  %v4202_v24 = vld [vmem:[#allocation8 + $0x578] sm:$0xff] }
  0x94   :  { %2508 = vmatpush.bf16.msrb.mxu3 %v4141_v25  ;;  %v4210_v25 = vld [vmem:[#allocation8 + $0x5b8] sm:$0xff] }
  0x95   :  { %2467 = vmatpush.bf16.msrb.mxu0 %v4116_v26  ;;  %v2944_v26 = vor.u32 %v4004_v16, %v2941_v17  ;;  %v4232_v16 = vld [vmem:[#allocation8 + $0x668] sm:$0xff] }
  0x96   :  { %2481 = vmatpush.bf16.msrb.mxu1 %v4124_v27  ;;  %v2952_v27 = vor.u32 %v4005_v18, %v2949_v19  ;;  %v4240_v17 = vld [vmem:[#allocation8 + $0x6a8] sm:$0xff]  ;;  %v4215_v18 = vld [vmem:[#allocation8 + $0x5e0] sm:$0xff] }
  0x97   :  { %2495 = vmatpush.bf16.msrb.mxu2 %v4132_v28  ;;  %v2948_v28 = vor.u32 %v4020_v21, %v2947_v20  ;;  %v4223_v19 = vld [vmem:[#allocation8 + $0x620] sm:$0xff] }
  0x98   :  { %2509 = vmatpush.bf16.msrb.mxu3 %v4140_v29  ;;  %v2956_v29 = vor.u32 %v4021_v23, %v2955_v22  ;;  %v4231_v20 = vld [vmem:[#allocation8 + $0x660] sm:$0xff]  ;;  %v4214_v22 = vld [vmem:[#allocation8 + $0x5d8] sm:$0xff] }
  0x99   :  { %2468 = vmatpush.bf16.msrb.mxu0 %v4115_v30  ;;  %v4185_v30 = vld [vmem:[#allocation8 + $0x4f0] sm:$0xff]  ;;  %v4239_v21 = vld [vmem:[#allocation8 + $0x6a0] sm:$0xff]  ;;  %v4222_v23 = vld [vmem:[#allocation8 + $0x618] sm:$0xff] }
  0x9a   :  { %2482 = vmatpush.bf16.msrb.mxu1 %v4123_v31  ;;  %v4193_v31 = vld [vmem:[#allocation8 + $0x530] sm:$0xff] }
  0x9b   :  { %2496 = vmatpush.bf16.msrb.mxu2 %v4131_v32  ;;  %v4201_v32 = vld [vmem:[#allocation8 + $0x570] sm:$0xff] }
  0x9c   :  { %2510 = vmatpush.bf16.msrb.mxu3 %v4139_v33  ;;  %2469 = vmatmul.bf16.vlgmr.msrb.gmra.mxu0 %v2928_v46  ;;  %v4209_v33 = vld [vmem:[#allocation8 + $0x5b0] sm:$0xff] }
  0x9d   :  { %2517 = vmatpush.bf16.msra.mxu0 %v4154_v34  ;;  %2483 = vmatmul.bf16.vlgmr.msrb.gmra.mxu1 %v2932_v48  ;;  %v4184_v34 = vld [vmem:[#allocation8 + $0x4e8] sm:$0xff]  ;;  %v4181_v46 = vld [vmem:[#allocation8 + $0x4d0] sm:$0xff] }
  0x9e   :  { %2531 = vmatpush.bf16.msra.mxu1 %v4162_v35  ;;  %2497 = vmatmul.bf16.vlgmr.msrb.gmra.mxu2 %v2936_v47  ;;  %v4192_v35 = vld [vmem:[#allocation8 + $0x528] sm:$0xff]  ;;  %v4189_v47 = vld [vmem:[#allocation8 + $0x510] sm:$0xff] }
  0x9f   :  { %2545 = vmatpush.bf16.msra.mxu2 %v4170_v44  ;;  %2511 = vmatmul.bf16.vlgmr.msrb.gmra.mxu3 %v2940_v49  ;;  %v4198_v44 = vld [vmem:[#allocation8 + $0x558] sm:$0xff]  ;;  %v4197_v48 = vld [vmem:[#allocation8 + $0x550] sm:$0xff] }
  0xa0   :  { %2559 = vmatpush.bf16.msra.mxu3 %v4178_v45  ;;  %v4206_v45 = vld [vmem:[#allocation8 + $0x598] sm:$0xff]  ;;  %v4205_v49 = vld [vmem:[#allocation8 + $0x590] sm:$0xff] }
  0xa1   :  { %2518 = vmatpush.bf16.msra.mxu0 %v4153_v50  ;;  %v4180_v50 = vld [vmem:[#allocation8 + $0x4c8] sm:$0xff] }
  0xa2   :  { %2532 = vmatpush.bf16.msra.mxu1 %v4161_v51  ;;  %v4188_v51 = vld [vmem:[#allocation8 + $0x508] sm:$0xff] }
  0xa3   :  { %2546 = vmatpush.bf16.msra.mxu2 %v4169_v52  ;;  %v4196_v52 = vld [vmem:[#allocation8 + $0x548] sm:$0xff] }
  0xa4   :  { %2560 = vmatpush.bf16.msra.mxu3 %v4177_v53  ;;  %v4204_v53 = vld [vmem:[#allocation8 + $0x588] sm:$0xff] }
  0xa5   :  { %2519 = vmatpush.bf16.msra.mxu0 %v4152_v54  ;;  %v4179_v54 = vld [vmem:[#allocation8 + $0x4c0] sm:$0xff] }
  0xa6   :  { %2533 = vmatpush.bf16.msra.mxu1 %v4160_v55  ;;  %v4187_v55 = vld [vmem:[#allocation8 + $0x500] sm:$0xff] }
  0xa7   :  { %2547 = vmatpush.bf16.msra.mxu2 %v4168_v56  ;;  %v4195_v56 = vld [vmem:[#allocation8 + $0x540] sm:$0xff] }
  0xa8   :  { %2561 = vmatpush.bf16.msra.mxu3 %v4176_v57  ;;  %v4203_v57 = vld [vmem:[#allocation8 + $0x580] sm:$0xff] }
  0xa9   :  { %2520 = vmatpush.bf16.msra.mxu0 %v4151_v58  ;;  %v4218_v58 = vld [vmem:[#allocation8 + $0x5f8] sm:$0xff] }
  0xaa   :  { %2534 = vmatpush.bf16.msra.mxu1 %v4159_v59  ;;  %v4226_v59 = vld [vmem:[#allocation8 + $0x638] sm:$0xff] }
  0xab   :  { %2548 = vmatpush.bf16.msra.mxu2 %v4167_v60  ;;  %v4006_v60 = vld [vmem:[#allocation2 + $0x4c] sm:$0xf] }
  0xac   :  { %2562 = vmatpush.bf16.msra.mxu3 %v4175_v61  ;;  %v2957_v61 = vld [vmem:[#allocation2 + $0xc0] sm:$0xf0] }
  0xad   :  { %2521 = vmatpush.bf16.msra.mxu0 %v4150_v62  ;;  %v4007_v62 = vld [vmem:[#allocation2 + $0x54] sm:$0xf] }
  0xae   :  { %2535 = vmatpush.bf16.msra.mxu1 %v4158_v63  ;;  %v2965_v63 = vld [vmem:[#allocation2 + $0xc8] sm:$0xf0] }
  0xaf   :  { %2549 = vmatpush.bf16.msra.mxu2 %v4166_v0  ;;  %v2963_v0 = vld [vmem:[#allocation2 + $0x50] sm:$0xf] }
  0xb0   :  { %2563 = vmatpush.bf16.msra.mxu3 %v4174_v1  ;;  %v4022_v1 = vld [vmem:[#allocation2 + $0xc4] sm:$0xf0] }
  0xb1   :  { %2522 = vmatpush.bf16.msra.mxu0 %v4149_v2  ;;  %v2971_v2 = vld [vmem:[#allocation2 + $0x58] sm:$0xf] }
  0xb2   :  { %2536 = vmatpush.bf16.msra.mxu1 %v4157_v3  ;;  %v4023_v3 = vld [vmem:[#allocation2 + $0xcc] sm:$0xf0] }
  0xb3   :  { %2550 = vmatpush.bf16.msra.mxu2 %v4165_v4  ;;  %v4234_v4 = vld [vmem:[#allocation8 + $0x678] sm:$0xff] }
  0xb4   :  { %2564 = vmatpush.bf16.msra.mxu3 %v4173_v5  ;;  %v4242_v5 = vld [vmem:[#allocation8 + $0x6b8] sm:$0xff] }
  0xb5   :  { %2523 = vmatpush.bf16.msra.mxu0 %v4148_v6  ;;  %v2960_v6 = vor.u32 %v4006_v60, %v2957_v61  ;;  %v4264_v60 = vld [vmem:[#allocation8 + $0x768] sm:$0xff] }
  0xb6   :  { %2537 = vmatpush.bf16.msra.mxu1 %v4156_v7  ;;  %v2968_v7 = vor.u32 %v4007_v62, %v2965_v63  ;;  %v4282_v61 = vld [vmem:[#allocation11 + $0x28] sm:$0xff]  ;;  %v4247_v62 = vld [vmem:[#allocation8 + $0x6e0] sm:$0xff] }
  0xb7   :  { %2551 = vmatpush.bf16.msra.mxu2 %v4164_v8  ;;  %v2964_v8 = vor.u32 %v4022_v1, %v2963_v0  ;;  %v4255_v63 = vld [vmem:[#allocation8 + $0x720] sm:$0xff] }
  0xb8   :  { %2565 = vmatpush.bf16.msra.mxu3 %v4172_v9  ;;  %v2972_v9 = vor.u32 %v4023_v3, %v2971_v2  ;;  %v4263_v0 = vld [vmem:[#allocation8 + $0x760] sm:$0xff]  ;;  %v4246_v2 = vld [vmem:[#allocation8 + $0x6d8] sm:$0xff] }
  0xb9   :  { %2524 = vmatpush.bf16.msra.mxu0 %v4147_v10  ;;  %v4217_v10 = vld [vmem:[#allocation8 + $0x5f0] sm:$0xff]  ;;  %v4281_v1 = vld [vmem:[#allocation11 + $0x20] sm:$0xff]  ;;  %v4254_v3 = vld [vmem:[#allocation8 + $0x718] sm:$0xff] }
  0xba   :  { %2538 = vmatpush.bf16.msra.mxu1 %v4155_v11  ;;  %v4225_v11 = vld [vmem:[#allocation8 + $0x630] sm:$0xff] }
  0xbb   :  { %2552 = vmatpush.bf16.msra.mxu2 %v4163_v12  ;;  %v4233_v12 = vld [vmem:[#allocation8 + $0x670] sm:$0xff] }
  0xbc   :  { %2566 = vmatpush.bf16.msra.mxu3 %v4171_v13  ;;  %2525 = vmatmul.bf16.vlgmr.msra.gmra.mxu0 %v2944_v26  ;;  %v4241_v13 = vld [vmem:[#allocation8 + $0x6b0] sm:$0xff] }
  0xbd   :  { %2573 = vmatpush.bf16.msrb.mxu0 %v4186_v14  ;;  %2539 = vmatmul.bf16.vlgmr.msra.gmra.mxu1 %v2948_v28  ;;  %v4216_v14 = vld [vmem:[#allocation8 + $0x5e8] sm:$0xff]  ;;  %v4213_v26 = vld [vmem:[#allocation8 + $0x5d0] sm:$0xff] }
  0xbe   :  { %2587 = vmatpush.bf16.msrb.mxu1 %v4194_v15  ;;  %2553 = vmatmul.bf16.vlgmr.msra.gmra.mxu2 %v2952_v27  ;;  %v4224_v15 = vld [vmem:[#allocation8 + $0x628] sm:$0xff]  ;;  %v4221_v27 = vld [vmem:[#allocation8 + $0x610] sm:$0xff] }
  0xbf   :  { %2601 = vmatpush.bf16.msrb.mxu2 %v4202_v24  ;;  %2567 = vmatmul.bf16.vlgmr.msra.gmra.mxu3 %v2956_v29  ;;  %v4230_v24 = vld [vmem:[#allocation8 + $0x658] sm:$0xff]  ;;  %v4229_v28 = vld [vmem:[#allocation8 + $0x650] sm:$0xff] }
  0xc0   :  { %2615 = vmatpush.bf16.msrb.mxu3 %v4210_v25  ;;  %v4238_v25 = vld [vmem:[#allocation8 + $0x698] sm:$0xff]  ;;  %v4237_v29 = vld [vmem:[#allocation8 + $0x690] sm:$0xff] }
  0xc1   :  { %2574 = vmatpush.bf16.msrb.mxu0 %v4185_v30  ;;  %v4212_v30 = vld [vmem:[#allocation8 + $0x5c8] sm:$0xff] }
  0xc2   :  { %2588 = vmatpush.bf16.msrb.mxu1 %v4193_v31  ;;  %v4220_v31 = vld [vmem:[#allocation8 + $0x608] sm:$0xff] }
  0xc3   :  { %2602 = vmatpush.bf16.msrb.mxu2 %v4201_v32  ;;  %v4228_v32 = vld [vmem:[#allocation8 + $0x648] sm:$0xff] }
  0xc4   :  { %2616 = vmatpush.bf16.msrb.mxu3 %v4209_v33  ;;  %v4236_v33 = vld [vmem:[#allocation8 + $0x688] sm:$0xff] }
  0xc5   :  { %2575 = vmatpush.bf16.msrb.mxu0 %v4184_v34  ;;  %v4211_v34 = vld [vmem:[#allocation8 + $0x5c0] sm:$0xff] }
  0xc6   :  { %2589 = vmatpush.bf16.msrb.mxu1 %v4192_v35  ;;  %v4219_v35 = vld [vmem:[#allocation8 + $0x600] sm:$0xff] }
  0xc7   :  { %2603 = vmatpush.bf16.msrb.mxu2 %v4200_v36  ;;  %v4227_v36 = vld [vmem:[#allocation8 + $0x640] sm:$0xff] }
  0xc8   :  { %2617 = vmatpush.bf16.msrb.mxu3 %v4208_v37  ;;  %v4235_v37 = vld [vmem:[#allocation8 + $0x680] sm:$0xff] }
  0xc9   :  { %2576 = vmatpush.bf16.msrb.mxu0 %v4183_v38  ;;  %v4250_v38 = vld [vmem:[#allocation8 + $0x6f8] sm:$0xff] }
  0xca   :  { %2590 = vmatpush.bf16.msrb.mxu1 %v4191_v39  ;;  %v4258_v39 = vld [vmem:[#allocation8 + $0x738] sm:$0xff] }
  0xcb   :  { %2604 = vmatpush.bf16.msrb.mxu2 %v4199_v40  ;;  %v4008_v40 = vld [vmem:[#allocation2 + $0x5c] sm:$0xf] }
  0xcc   :  { %2618 = vmatpush.bf16.msrb.mxu3 %v4207_v41  ;;  %v2973_v41 = vld [vmem:[#allocation2 + $0xd0] sm:$0xf0] }
  0xcd   :  { %2577 = vmatpush.bf16.msrb.mxu0 %v4182_v42  ;;  %v4009_v42 = vld [vmem:[#allocation2 + $0x64] sm:$0xf] }
  0xce   :  { %2591 = vmatpush.bf16.msrb.mxu1 %v4190_v43  ;;  %v2981_v43 = vld [vmem:[#allocation2 + $0xd8] sm:$0xf0] }
  0xcf   :  { %2605 = vmatpush.bf16.msrb.mxu2 %v4198_v44  ;;  %v2979_v44 = vld [vmem:[#allocation2 + $0x60] sm:$0xf] }
  0xd0   :  { %2619 = vmatpush.bf16.msrb.mxu3 %v4206_v45  ;;  %v4024_v45 = vld [vmem:[#allocation2 + $0xd4] sm:$0xf0] }
  0xd1   :  { %2578 = vmatpush.bf16.msrb.mxu0 %v4181_v46  ;;  %v2987_v46 = vld [vmem:[#allocation2 + $0x68] sm:$0xf] }
  0xd2   :  { %2592 = vmatpush.bf16.msrb.mxu1 %v4189_v47  ;;  %v4025_v47 = vld [vmem:[#allocation2 + $0xdc] sm:$0xf0] }
  0xd3   :  { %2606 = vmatpush.bf16.msrb.mxu2 %v4197_v48  ;;  %v4266_v48 = vld [vmem:[#allocation8 + $0x778] sm:$0xff] }
  0xd4   :  { %2620 = vmatpush.bf16.msrb.mxu3 %v4205_v49  ;;  %v4284_v49 = vld [vmem:[#allocation11 + $0x38] sm:$0xff] }
  0xd5   :  { %2579 = vmatpush.bf16.msrb.mxu0 %v4180_v50  ;;  %v2976_v50 = vor.u32 %v4008_v40, %v2973_v41 }
  0xd6   :  { %2593 = vmatpush.bf16.msrb.mxu1 %v4188_v51  ;;  %v2984_v51 = vor.u32 %v4009_v42, %v2981_v43 }
  0xd7   :  { %2607 = vmatpush.bf16.msrb.mxu2 %v4196_v52  ;;  %v2980_v52 = vor.u32 %v4024_v45, %v2979_v44 }
  0xd8   :  { %2621 = vmatpush.bf16.msrb.mxu3 %v4204_v53  ;;  %v2988_v53 = vor.u32 %v4025_v47, %v2987_v46 }
  0xd9   :  { %2580 = vmatpush.bf16.msrb.mxu0 %v4179_v54  ;;  %v4249_v54 = vld [vmem:[#allocation8 + $0x6f0] sm:$0xff] }
  0xda   :  { %2594 = vmatpush.bf16.msrb.mxu1 %v4187_v55  ;;  %v4257_v55 = vld [vmem:[#allocation8 + $0x730] sm:$0xff] }
  0xdb   :  { %2608 = vmatpush.bf16.msrb.mxu2 %v4195_v56  ;;  %v4265_v56 = vld [vmem:[#allocation8 + $0x770] sm:$0xff] }
  0xdc   :  { %2622 = vmatpush.bf16.msrb.mxu3 %v4203_v57  ;;  %2581 = vmatmul.bf16.vlgmr.msrb.gmra.mxu0 %v2960_v6  ;;  %v4283_v57 = vld [vmem:[#allocation11 + $0x30] sm:$0xff] }
  0xdd   :  { %2629 = vmatpush.bf16.msra.mxu0 %v4218_v58  ;;  %2595 = vmatmul.bf16.vlgmr.msrb.gmra.mxu1 %v2964_v8  ;;  %v4248_v58 = vld [vmem:[#allocation8 + $0x6e8] sm:$0xff]  ;;  %v4245_v6 = vld [vmem:[#allocation8 + $0x6d0] sm:$0xff] }
  0xde   :  { %2643 = vmatpush.bf16.msra.mxu1 %v4226_v59  ;;  %2609 = vmatmul.bf16.vlgmr.msrb.gmra.mxu2 %v2968_v7  ;;  %v4256_v59 = vld [vmem:[#allocation8 + $0x728] sm:$0xff]  ;;  %v4253_v7 = vld [vmem:[#allocation8 + $0x710] sm:$0xff] }
  0xdf   :  { %2657 = vmatpush.bf16.msra.mxu2 %v4234_v4  ;;  %2623 = vmatmul.bf16.vlgmr.msrb.gmra.mxu3 %v2972_v9  ;;  %v4262_v4 = vld [vmem:[#allocation8 + $0x758] sm:$0xff]  ;;  %v4261_v8 = vld [vmem:[#allocation8 + $0x750] sm:$0xff] }
  0xe0   :  { %2671 = vmatpush.bf16.msra.mxu3 %v4242_v5  ;;  %v4280_v5 = vld [vmem:[#allocation11 + $0x18] sm:$0xff]  ;;  %v4279_v9 = vld [vmem:[#allocation11 + $0x10] sm:$0xff] }
  0xe1   :  { %2630 = vmatpush.bf16.msra.mxu0 %v4217_v10  ;;  %v4244_v10 = vld [vmem:[#allocation8 + $0x6c8] sm:$0xff] }
  0xe2   :  { %2644 = vmatpush.bf16.msra.mxu1 %v4225_v11  ;;  %v4252_v11 = vld [vmem:[#allocation8 + $0x708] sm:$0xff] }
  0xe3   :  { %2658 = vmatpush.bf16.msra.mxu2 %v4233_v12  ;;  %v4260_v12 = vld [vmem:[#allocation8 + $0x748] sm:$0xff] }
  0xe4   :  { %2672 = vmatpush.bf16.msra.mxu3 %v4241_v13  ;;  %v4278_v13 = vld [vmem:[#allocation11 + $0x8] sm:$0xff] }
  0xe5   :  { %2631 = vmatpush.bf16.msra.mxu0 %v4216_v14  ;;  %v4243_v14 = vld [vmem:[#allocation8 + $0x6c0] sm:$0xff] }
  0xe6   :  { %2645 = vmatpush.bf16.msra.mxu1 %v4224_v15  ;;  %v4251_v15 = vld [vmem:[#allocation8 + $0x700] sm:$0xff] }
  0xe7   :  { %2659 = vmatpush.bf16.msra.mxu2 %v4232_v16  ;;  %v4259_v16 = vld [vmem:[#allocation8 + $0x740] sm:$0xff] }
  0xe8   :  { %2673 = vmatpush.bf16.msra.mxu3 %v4240_v17  ;;  %v4010_v17 = vld [vmem:[#allocation2 + $0x6c] sm:$0xf] }
  0xe9   :  { %2632 = vmatpush.bf16.msra.mxu0 %v4215_v18  ;;  %v2989_v18 = vld [vmem:[#allocation2 + $0xe0] sm:$0xf0] }
  0xea   :  { %2646 = vmatpush.bf16.msra.mxu1 %v4223_v19  ;;  %v2995_v19 = vld [vmem:[#allocation2 + $0x70] sm:$0xf] }
  0xeb   :  { %2660 = vmatpush.bf16.msra.mxu2 %v4231_v20  ;;  %v4026_v20 = vld [vmem:[#allocation2 + $0xe4] sm:$0xf0] }
  0xec   :  { %2674 = vmatpush.bf16.msra.mxu3 %v4239_v21  ;;  %v4277_v21 = vld [vmem:[#allocation11] sm:$0xff] }
  0xed   :  { %2633 = vmatpush.bf16.msra.mxu0 %v4214_v22  ;;  %v4011_v22 = vld [vmem:[#allocation2 + $0x74] sm:$0xf] }
  0xee   :  { %2647 = vmatpush.bf16.msra.mxu1 %v4222_v23  ;;  %v2997_v23 = vld [vmem:[#allocation2 + $0xe8] sm:$0xf0] }
  0xef   :  { %2661 = vmatpush.bf16.msra.mxu2 %v4230_v24  ;;  %v2992_v24 = vor.u32 %v4010_v17, %v2989_v18 }
  0xf0   :  { %2675 = vmatpush.bf16.msra.mxu3 %v4238_v25  ;;  %v2996_v25 = vor.u32 %v4026_v20, %v2995_v19 }
  0xf1   :  { %2634 = vmatpush.bf16.msra.mxu0 %v4213_v26  ;;  %v712_v26 = vpop.f32.mrf.mxu0 }
  0xf2   :  { %2648 = vmatpush.bf16.msra.mxu1 %v4221_v27  ;;  %v3000_v27 = vor.u32 %v4011_v22, %v2997_v23 }
  0xf3   :  { %2662 = vmatpush.bf16.msra.mxu2 %v4229_v28  ;;  %v4276_v28 = vld [vmem:[#allocation7] sm:$0xff] }
  0xf4   :  { %2676 = vmatpush.bf16.msra.mxu3 %v4237_v29  ;;  %v2316_v29 = vpop.f32.mrf.mxu1 }
  0xf5   :  { %2635 = vmatpush.bf16.msra.mxu0 %v4212_v30  ;;  %v2330_v30 = vpop.f32.mrf.mxu2  ;;  %v2317_v46 = vadd.f32 %v2316_v29, %v712_v26 }
  0xf6   :  { %2649 = vmatpush.bf16.msra.mxu1 %v4220_v31  ;;  %v2344_v31 = vpop.f32.mrf.mxu3 }
  0xf7   :  { %2663 = vmatpush.bf16.msra.mxu2 %v4228_v32 }
  0xf8   :  { %2677 = vmatpush.bf16.msra.mxu3 %v4236_v33 }
  0xf9   :  { %2636 = vmatpush.bf16.msra.mxu0 %v4211_v34  ;;  %v714_v32 = vpop.f32.mrf.mxu0 }
  0xfa   :  { %2650 = vmatpush.bf16.msra.mxu1 %v4219_v35 }
  0xfb   :  { %2664 = vmatpush.bf16.msra.mxu2 %v4227_v36 }
  0xfc   :  { %2678 = vmatpush.bf16.msra.mxu3 %v4235_v37  ;;  %2637 = vmatmul.bf16.vlgmr.msra.gmra.mxu0 %v2976_v50  ;;  %v2318_v33 = vpop.f32.mrf.mxu1 }
  0xfd   :  { %2685 = vmatpush.bf16.msrb.mxu0 %v4250_v38  ;;  %2651 = vmatmul.bf16.vlgmr.msra.gmra.mxu1 %v2980_v52  ;;  %v2332_v34 = vpop.f32.mrf.mxu2 }
  0xfe   :  { %2699 = vmatpush.bf16.msrb.mxu1 %v4258_v39  ;;  %2665 = vmatmul.bf16.vlgmr.msra.gmra.mxu2 %v2984_v51  ;;  %v2346_v35 = vpop.f32.mrf.mxu3 }
  0xff   :  { %2713 = vmatpush.bf16.msrb.mxu2 %v4266_v48  ;;  %2679 = vmatmul.bf16.vlgmr.msra.gmra.mxu3 %v2988_v53 }
 0x100   :  { %2799 = vmatpush.bf16.msrb.mxu3 %v4284_v49  ;;  %v2331_v49 = vadd.f32 %v2330_v30, %v2317_v46 }
 0x101   :  { %2686 = vmatpush.bf16.msrb.mxu0 %v4249_v54  ;;  %v2358_v36 = vpop.f32.mrf.mxu0 }
 0x102   :  { %2700 = vmatpush.bf16.msrb.mxu1 %v4257_v55  ;;  %v2345_v52 = vadd.f32 %v2344_v31, %v2331_v49  ;;  %v2319_v55 = vadd.f32 %v2318_v33, %v714_v32 }
 0x103   :  { %2714 = vmatpush.bf16.msrb.mxu2 %v4265_v56 }
 0x104   :  { %2800 = vmatpush.bf16.msrb.mxu3 %v4283_v57  ;;  %v2372_v37 = vpop.f32.mrf.mxu1  ;;  %v2359_v56 = vadd.f32 %v2358_v36, %v2345_v52 }
 0x105   :  { %2687 = vmatpush.bf16.msrb.mxu0 %v4248_v58  ;;  %v2386_v38 = vpop.f32.mrf.mxu2 }
 0x106   :  { %2701 = vmatpush.bf16.msrb.mxu1 %v4256_v59  ;;  %v2400_v39 = vpop.f32.mrf.mxu3  ;;  %v2333_v59 = vadd.f32 %v2332_v34, %v2319_v55 }
 0x107   :  { %2715 = vmatpush.bf16.msrb.mxu2 %v4264_v60  ;;  %v2373_v60 = vadd.f32 %v2372_v37, %v2359_v56 }
 0x108   :  { %2801 = vmatpush.bf16.msrb.mxu3 %v4282_v61 }
 0x109   :  { %2688 = vmatpush.bf16.msrb.mxu0 %v4247_v62  ;;  %v2360_v40 = vpop.f32.mrf.mxu0 }
 0x10a   :  { %2702 = vmatpush.bf16.msrb.mxu1 %v4255_v63  ;;  %v2347_v63 = vadd.f32 %v2346_v35, %v2333_v59 }
 0x10b   :  { %2716 = vmatpush.bf16.msrb.mxu2 %v4263_v0  ;;  %v2387_v0 = vadd.f32 %v2386_v38, %v2373_v60 }
 0x10c   :  { %2802 = vmatpush.bf16.msrb.mxu3 %v4281_v1  ;;  %v2374_v41 = vpop.f32.mrf.mxu1  ;;  %v2361_v1 = vadd.f32 %v2360_v40, %v2347_v63 }
 0x10d   :  { %2689 = vmatpush.bf16.msrb.mxu0 %v4246_v2  ;;  %v2388_v42 = vpop.f32.mrf.mxu2 }
 0x10e   :  { %2703 = vmatpush.bf16.msrb.mxu1 %v4254_v3  ;;  %v2402_v43 = vpop.f32.mrf.mxu3  ;;  %v2401_v3 = vadd.f32 %v2400_v39, %v2387_v0 }
 0x10f   :  { %2717 = vmatpush.bf16.msrb.mxu2 %v4262_v4 }
 0x110   :  { %2803 = vmatpush.bf16.msrb.mxu3 %v4280_v5  ;;  %v2375_v5 = vadd.f32 %v2374_v41, %v2361_v1 }
 0x111   :  { %2690 = vmatpush.bf16.msrb.mxu0 %v4245_v6  ;;  %v2414_v44 = vpop.f32.mrf.mxu0 }
 0x112   :  { %2704 = vmatpush.bf16.msrb.mxu1 %v4253_v7  ;;  %v2415_v6 = vadd.f32 %v2414_v44, %v2401_v3  ;;  %v2389_v7 = vadd.f32 %v2388_v42, %v2375_v5 }
 0x113   :  { %2718 = vmatpush.bf16.msrb.mxu2 %v4261_v8 }
 0x114   :  { %2804 = vmatpush.bf16.msrb.mxu3 %v4279_v9  ;;  %v2428_v45 = vpop.f32.mrf.mxu1 }
 0x115   :  { %2691 = vmatpush.bf16.msrb.mxu0 %v4244_v10  ;;  %v2442_v47 = vpop.f32.mrf.mxu2  ;;  %v2429_v10 = vadd.f32 %v2428_v45, %v2415_v6 }
 0x116   :  { %2705 = vmatpush.bf16.msrb.mxu1 %v4252_v11  ;;  %v2456_v48 = vpop.f32.mrf.mxu3 }
 0x117   :  { %2719 = vmatpush.bf16.msrb.mxu2 %v4260_v12  ;;  %v2403_v12 = vadd.f32 %v2402_v43, %v2389_v7 }
 0x118   :  { %2805 = vmatpush.bf16.msrb.mxu3 %v4278_v13  ;;  %v2443_v13 = vadd.f32 %v2442_v47, %v2429_v10 }
 0x119   :  { %2692 = vmatpush.bf16.msrb.mxu0 %v4243_v14  ;;  %v2416_v50 = vpop.f32.mrf.mxu0 }
 0x11a   :  { %2706 = vmatpush.bf16.msrb.mxu1 %v4251_v15  ;;  %v2417_v15 = vadd.f32 %v2416_v50, %v2403_v12 }
 0x11b   :  { %2720 = vmatpush.bf16.msrb.mxu2 %v4259_v16  ;;  %v2457_v16 = vadd.f32 %v2456_v48, %v2443_v13 }
 0x11c   :  { %2806 = vmatpush.bf16.msrb.mxu3 %v4277_v21  ;;  %2693 = vmatmul.bf16.vlgmr.msrb.gmra.mxu0 %v2992_v24  ;;  %v2430_v51 = vpop.f32.mrf.mxu1 }
 0x11d   :  { %2707 = vmatmul.bf16.vlgmr.msrb.gmra.mxu1 %v2996_v25  ;;  %v2444_v53 = vpop.f32.mrf.mxu2  ;;  %v2431_v19 = vadd.f32 %v2430_v51, %v2417_v15 }
 0x11e   :  { %2721 = vmatmul.bf16.vlgmr.msrb.gmra.mxu2 %v3000_v27  ;;  %v2458_v54 = vpop.f32.mrf.mxu3 }
 0x11f   :  { %2807 = vmatmul.bf16.vlgmr.msrb.gmra.mxu3 %v4276_v28  ;;  %v2445_v21 = vadd.f32 %v2444_v53, %v2431_v19 }
 0x121   :  { %v2470_v57 = vpop.f32.mrf.mxu0  ;;  %v2459_v25 = vadd.f32 %v2458_v54, %v2445_v21 }
 0x122   :  { %v2471_v20 = vadd.f32 %v2470_v57, %v2457_v16 }
 0x124   :  { %v2484_v58 = vpop.f32.mrf.mxu1 }
 0x125   :  { %v2498_v61 = vpop.f32.mrf.mxu2  ;;  %v2485_v23 = vadd.f32 %v2484_v58, %v2471_v20 }
 0x126   :  { %v2512_v62 = vpop.f32.mrf.mxu3 }
 0x127   :  { %v2499_v26 = vadd.f32 %v2498_v61, %v2485_v23 }
 0x129   :  { %v2472_v2 = vpop.f32.mrf.mxu0  ;;  %v2513_v30 = vadd.f32 %v2512_v62, %v2499_v26 }
 0x12a   :  { %v2473_v27 = vadd.f32 %v2472_v2, %v2459_v25 }
 0x12c   :  { %v2486_v4 = vpop.f32.mrf.mxu1 }
 0x12d   :  { %v2500_v8 = vpop.f32.mrf.mxu2  ;;  %v2487_v32 = vadd.f32 %v2486_v4, %v2473_v27 }
 0x12e   :  { %v2514_v9 = vpop.f32.mrf.mxu3 }
 0x12f   :  { %v2501_v35 = vadd.f32 %v2500_v8, %v2487_v32 }
 0x131   :  { %v2515_v39 = vadd.f32 %v2514_v9, %v2501_v35 }
 0x139   :  { %v2526_v11 = vpop.f32.mrf.mxu0 }
 0x13a   :  { %v2540_v14 = vpop.f32.mrf.mxu1  ;;  %v2527_v33 = vadd.f32 %v2526_v11, %v2513_v30 }
 0x13c   :  { %v2541_v36 = vadd.f32 %v2540_v14, %v2527_v33 }
 0x141   :  { %v2554_v17 = vpop.f32.mrf.mxu2  ;;  %v2528_v22 = vpop.f32.mrf.mxu0 }
 0x142   :  { %v2568_v18 = vpop.f32.mrf.mxu3  ;;  %v2542_v24 = vpop.f32.mrf.mxu1  ;;  %v2555_v40 = vadd.f32 %v2554_v17, %v2541_v36  ;;  %v2529_v41 = vadd.f32 %v2528_v22, %v2515_v39  ;;  %v4298_v17 = vld [vmem:[%s4575_s6] ss:$0 sm:$0xff]  ;;  %s4488_s6 = smov 128  }
 0x144   :  { %v2569_v43 = vadd.f32 %v2568_v18, %v2555_v40  ;;  %v2543_v45 = vadd.f32 %v2542_v24, %v2529_v41 }
 0x149   :  { %v2556_v28 = vpop.f32.mrf.mxu2 }
 0x14a   :  { %v2570_v29 = vpop.f32.mrf.mxu3  ;;  %v2557_v47 = vadd.f32 %v2556_v28, %v2543_v45 }
 0x14c   :  { %v2571_v52 = vadd.f32 %v2570_v29, %v2557_v47 }
 0x159   :  { %v2582_v31 = vpop.f32.mrf.mxu0 }
 0x15a   :  { %v2596_v34 = vpop.f32.mrf.mxu1  ;;  %v2583_v46 = vadd.f32 %v2582_v31, %v2569_v43 }
 0x15c   :  { %v2597_v50 = vadd.f32 %v2596_v34, %v2583_v46 }
 0x161   :  { %v2610_v37 = vpop.f32.mrf.mxu2  ;;  %v2584_v42 = vpop.f32.mrf.mxu0 }
 0x162   :  { %v2624_v38 = vpop.f32.mrf.mxu3  ;;  %v2598_v44 = vpop.f32.mrf.mxu1  ;;  %v2611_v53 = vadd.f32 %v2610_v37, %v2597_v50  ;;  %v2585_v55 = vadd.f32 %v2584_v42, %v2571_v52 }
 0x164   :  { %v2625_v56 = vadd.f32 %v2624_v38, %v2611_v53  ;;  %v2599_v59 = vadd.f32 %v2598_v44, %v2585_v55 }
 0x169   :  { %v2612_v48 = vpop.f32.mrf.mxu2 }
 0x16a   :  { %v2626_v49 = vpop.f32.mrf.mxu3  ;;  %v2613_v61 = vadd.f32 %v2612_v48, %v2599_v59 }
 0x16c   :  { %v2627_v1 = vadd.f32 %v2626_v49, %v2613_v61 }
 0x179   :  { %v2638_v51 = vpop.f32.mrf.mxu0 }
 0x17a   :  { %v2652_v54 = vpop.f32.mrf.mxu1  ;;  %v2639_v60 = vadd.f32 %v2638_v51, %v2625_v56 }
 0x17c   :  { %v2653_v63 = vadd.f32 %v2652_v54, %v2639_v60 }
 0x181   :  { %v2666_v57 = vpop.f32.mrf.mxu2  ;;  %v2640_v62 = vpop.f32.mrf.mxu0 }
 0x182   :  { %v2680_v58 = vpop.f32.mrf.mxu3  ;;  %v2654_v0 = vpop.f32.mrf.mxu1  ;;  %v2667_v2 = vadd.f32 %v2666_v57, %v2653_v63  ;;  %v2641_v3 = vadd.f32 %v2640_v62, %v2627_v1 }
 0x184   :  { %v2681_v6 = vadd.f32 %v2680_v58, %v2667_v2  ;;  %v2655_v8 = vadd.f32 %v2654_v0, %v2641_v3 }
 0x189   :  { %v2668_v4 = vpop.f32.mrf.mxu2 }
 0x18a   :  { %v2682_v5 = vpop.f32.mrf.mxu3  ;;  %v2669_v11 = vadd.f32 %v2668_v4, %v2655_v8 }
 0x18c   :  { %v2683_v15 = vadd.f32 %v2682_v5, %v2669_v11 }
 0x199   :  { %v2694_v7 = vpop.f32.mrf.mxu0 }
 0x19a   :  { %v2695_v9 = vadd.f32 %v2694_v7, %v2681_v6  ;;  %v2708_v10 = vpop.f32.mrf.mxu1 }
 0x19c   :  { %v2709_v12 = vadd.f32 %v2708_v10, %v2695_v9 }
 0x1a1   :  { %v2722_v13 = vpop.f32.mrf.mxu2  ;;  %v2696_v18 = vpop.f32.mrf.mxu0 }
 0x1a2   :  { %v2808_v14 = vpop.f32.mrf.mxu3  ;;  %v2723_v16 = vadd.f32 %v2722_v13, %v2709_v12  ;;  %v2697_v20 = vadd.f32 %v2696_v18, %v2683_v15  ;;  %v2710_v22 = vpop.f32.mrf.mxu1 }
 0x1a4   :  { %v2813_v19 = vadd.f32 %v2808_v14, %v2723_v16  ;;  %v2711_v23 = vadd.f32 %v2710_v22, %v2697_v20 }
 0x1a6   :  { %v2819_v21 = vadd.f32 %v4298_v17, %v2813_v19 }
 0x1a8   :  { %2821 = vst [vmem:[#allocation13] sm:$0xff] %v2819_v21 }
 0x1a9   :  { %v2724_v24 = vpop.f32.mrf.mxu2 }
 0x1aa   :  { %v2725_v25 = vadd.f32 %v2724_v24, %v2711_v23  ;;  %v2810_v26 = vpop.f32.mrf.mxu3 }
 0x1ac   :  { %v2814_v27 = vadd.f32 %v2810_v26, %v2725_v25 }
 0x1ae   :  { %v2820_v28 = vadd.f32 %v4298_v17, %v2814_v27 }
 0x1b0   :  { %2822 = vst [vmem:[#allocation13 + $0x8] sm:$0xff] %v2820_v28 }
 0x1b1   :  { %2835 = dma.vmem_to_hbm [thread:$0]  %s2828_s9, 256, %s2830_s12, [#allocation4], %s4488_s6, %s4488_s6, %s4489_s13  }
 0x1b2   :  { %4475 = dma.done.wait [#allocation4], 256  }
 0x1b3   :  { %4476 = vsyncadd [#allocation4], 4294967040 }
 0x1b4   :  { %2840 = vsyncpa [#allocation3], 1 }
 0x1b5   :  { %2841 = vsyncpa [#allocation6], 1 }
 0x1b6   :  { %2842 = vsyncpa [#allocation9], 1 }
 0x1b7   :  { %2843 = vsyncpa [#allocation12], 1 }
 0x1b8   :  { %2844 = vsyncpa [#allocation4], 1 }

</bundles_post_ra>
